<compile_context>
chip_gen: v7x
topology: tpu7x:2x2x1
jax: 0.10.0
libtpu: 0.0.40
codegen_flags: <defaults>
</compile_context>

<pallas_src>
import functools

import jax
import jax.numpy as jnp
from jax.experimental import pallas as pl
from jax.experimental.pallas import tpu as pltpu

_B_TILE_MAX = 2048   # amortizes ~0.35 us/step grid overhead, keeps VMEM tiny
_LANE = 128


def _round_up(n, m):
    return ((n + m - 1) // m) * m


def mlp_kernel(x_ref, w1_ref, b1_ref, w2_ref, b2_ref, w3_ref, b3_ref, o_ref):
    # x_ref: (20, Bt) bf16      w1: (64, 20) bf16   b1: (64, 1) f32
    # w2: (32, 64) bf16         b2: (32, 1) f32
    # w3: (32, 1) f32           b3: (1,) f32 scalar in SMEM
    # o_ref: (1, Bt) f32        -- lane-dense output block.
    x = x_ref[...]

    # Layer 1: (64, 20) @ (20, Bt) -> (64, Bt).  bf16 MXU pass, f32 acc.
    h1 = jnp.dot(w1_ref[...], x, preferred_element_type=jnp.float32)
    h1 = jnp.maximum(h1 + b1_ref[...], 0.0)          # f32 VPU epilogue

    # Layer 2: (32, 64) @ (64, Bt) -> (32, Bt).  Cast h1 to bf16 for the MXU.
    h2 = jnp.dot(w2_ref[...], h1.astype(jnp.bfloat16),
                 preferred_element_type=jnp.float32)
    h2 = jnp.maximum(h2 + b2_ref[...], 0.0)          # f32 VPU epilogue

    # Layer 3 (32 -> 1): avoid a 1-row MXU pass; VPU broadcast-multiply then
    # sublane (XLU) reduction, bias added as a scalar from SMEM.
    y = jnp.sum(h2 * w3_ref[...], axis=0, keepdims=True) + b3_ref[0]
    o_ref[...] = y


@functools.partial(jax.jit)
def trading_model_forward(x, params):
    """x: (B, 20) float32 -> (B, 1) float32."""
    w1, b1, w2, b2, w3, b3 = params
    B, F = x.shape

    # --- batch tiling: lane-aligned, >= 2 grid steps when the batch allows it
    b_pad = max(_LANE, _round_up(B, _LANE))
    bt = min(_B_TILE_MAX, b_pad)
    if b_pad > _LANE:
        # v7x has 2 TensorCores: a "parallel" grid with >= 2 steps is the only
        # way the second TC gets work; also enables DMA/compute overlap.
        bt = min(bt, _round_up((b_pad + 1) // 2, _LANE))
    b_pad = _round_up(b_pad, bt)
    n_tiles = b_pad // bt

    # Relayout x once: cast -> transpose -> pad (fused by XLA), bf16 so the
    # extra HBM pass and the kernel's x DMA are both half width.
    x_t = jnp.pad(x.astype(jnp.bfloat16).T, ((0, 0), (0, b_pad - B)))

    # Pre-cast the resident MXU weights once (kernel never re-casts them).
    w1_mx = w1.astype(jnp.bfloat16)          # (64, 20)
    w2_mx = w2.astype(jnp.bfloat16)          # (32, 64)
    b3_s = b3.reshape((1,)).astype(jnp.float32)

    out_shape = jax.ShapeDtypeStruct((1, b_pad), jnp.float32)

    resident = lambda a: pl.BlockSpec(a.shape, lambda i: (0, 0))

    out_t = pl.pallas_call(
        mlp_kernel,
        out_shape=out_shape,
        grid=(n_tiles,),
        in_specs=[
            pl.BlockSpec((F, bt), lambda i: (0, i)),            # x block (bf16)
            resident(w1_mx), resident(b1),                      # layer 1
            resident(w2_mx), resident(b2),                      # layer 2
            resident(w3),                                       # layer 3 weight
            pl.BlockSpec(memory_space=pltpu.MemorySpace.SMEM),  # b3 scalar
        ],
        out_specs=pl.BlockSpec((1, bt), lambda i: (0, i)),
        compiler_params=pltpu.CompilerParams(
            dimension_semantics=("parallel",)),
    )(x_t, w1_mx, b1, w2_mx, b2, w3, b3_s)

    # Back to the caller's (B, 1) layout; drop padded columns.
    return out_t[:, :B].T


def init_params(key):
    """Deterministic init matching nn.Linear shapes of TradingModel.

    Weights are kept in PyTorch (out, in) layout so the kernel computes
    W @ x directly.  Biases are column vectors (out, 1) for lane-broadcast;
    the final-layer weight is stored as (in, 1) = (32, 1) for the VPU
    multiply+reduce epilogue, and b3 is a (1, 1) scalar.
    """
    layers = [(20, 64), (64, 32), (32, 1)]
    params = []
    for fan_in, fan_out in layers:
        kw, kb, key = jax.random.split(key, 3)
        bound = 1.0 / jnp.sqrt(fan_in)  # PyTorch default Linear init range
        w = jax.random.uniform(kw, (fan_out, fan_in), jnp.float32, -bound, bound)
        b = jax.random.uniform(kb, (fan_out, 1), jnp.float32, -bound, bound)
        params += [w, b]
    w1, b1, w2, b2, w3, b3 = params
    # Store final-layer weight transposed (32, 1) for the broadcast epilogue.
    return (w1, b1, w2, b2, w3.T, b3)


if __name__ == "__main__":
    key = jax.random.PRNGKey(0)
    k_x, k_p = jax.random.split(key)

    B = 8
    x = jax.random.normal(k_x, (B, 20), dtype=jnp.float32)
    params = init_params(k_p)

    out = trading_model_forward(x, params)
    jax.block_until_ready(out)

    # Pure-JAX f32 reference of the same forward pass (weights in (out, in)).
    w1, b1, w2, b2, w3, b3 = params
    ref = jnp.maximum(x @ w1.T + b1.T, 0.0)
    ref = jnp.maximum(ref @ w2.T + b2.T, 0.0)
    ref = ref @ w3 + b3  # w3 stored as (32, 1), b3 as (1, 1)

    assert out.shape == (B, 1)
    # Kernel uses bf16 MXU operands with f32 accumulation -> loosened tolerance.
    assert jnp.allclose(out, ref, atol=1e-2, rtol=1e-2)

    print("KERNEL_OK")
</pallas_src>

<mosaic_0001>
module attributes {stable_mosaic.version = 11 : i64} {
  func.func @mlp_kernel(%arg0: i32, %arg1: memref<20x128xbf16, #tpu.memory_space<vmem>>, %arg2: memref<64x20xbf16, #tpu.memory_space<vmem>>, %arg3: memref<64x1xf32, #tpu.memory_space<vmem>>, %arg4: memref<32x64xbf16, #tpu.memory_space<vmem>>, %arg5: memref<32x1xf32, #tpu.memory_space<vmem>>, %arg6: memref<32x1xf32, #tpu.memory_space<vmem>>, %arg7: memref<1xf32, #tpu.memory_space<smem>>, %arg8: memref<1x128xf32, #tpu.memory_space<vmem>>) attributes {dimension_semantics = [#tpu.dimension_semantics<parallel>], iteration_bounds = array<i64: 1>, scalar_prefetch = 0 : i64, scratch_operands = 0 : i64, tpu.core_type = #tpu.core_type<tc>, window_params = [{transform_indices = @transform_0, window_bounds = array<i64: 20, 128>}, {pipeline_mode = #tpu.pipeline_mode<synchronous>, transform_indices = @transform_1, window_bounds = array<i64: 64, 20>}, {pipeline_mode = #tpu.pipeline_mode<synchronous>, transform_indices = @transform_2, window_bounds = array<i64: 64, 1>}, {pipeline_mode = #tpu.pipeline_mode<synchronous>, transform_indices = @transform_3, window_bounds = array<i64: 32, 64>}, {pipeline_mode = #tpu.pipeline_mode<synchronous>, transform_indices = @transform_4, window_bounds = array<i64: 32, 1>}, {pipeline_mode = #tpu.pipeline_mode<synchronous>, transform_indices = @transform_5, window_bounds = array<i64: 32, 1>}, {transform_indices = @transform_6, window_bounds = array<i64: 1>}, {transform_indices = @transform_7, window_bounds = array<i64: 1, 128>}]} {
    %c0 = arith.constant 0 : index
    %c0_0 = arith.constant 0 : index
    %0 = vector.load %arg1[%c0, %c0_0] : memref<20x128xbf16, #tpu.memory_space<vmem>>, vector<20x128xbf16>
    %c0_1 = arith.constant 0 : index
    %c0_2 = arith.constant 0 : index
    %1 = vector.load %arg2[%c0_1, %c0_2] : memref<64x20xbf16, #tpu.memory_space<vmem>>, vector<64x20xbf16>
    %cst = arith.constant dense<0.000000e+00> : vector<64x128xf32>
    %2 = tpu.matmul %1, %0, %cst {dimension_numbers = #tpu.dot_dimension_numbers<[1], [0], [0], [1], [0, 0, 1, 1], [], []>} : vector<64x20xbf16>, vector<20x128xbf16>, vector<64x128xf32> -> vector<64x128xf32>
    %c0_3 = arith.constant 0 : index
    %c0_4 = arith.constant 0 : index
    %3 = vector.load %arg3[%c0_3, %c0_4] : memref<64x1xf32, #tpu.memory_space<vmem>>, vector<64x1xf32>
    %4 = vector.broadcast %3 : vector<64x1xf32> to vector<64x128xf32>
    %5 = arith.addf %2, %4 : vector<64x128xf32>
    %cst_5 = arith.constant 0.000000e+00 : f32
    %6 = vector.broadcast %cst_5 : f32 to vector<64x128xf32>
    %7 = arith.maximumf %5, %6 : vector<64x128xf32>
    %c0_6 = arith.constant 0 : index
    %c0_7 = arith.constant 0 : index
    %8 = vector.load %arg4[%c0_6, %c0_7] : memref<32x64xbf16, #tpu.memory_space<vmem>>, vector<32x64xbf16>
    %9 = arith.truncf %7 : vector<64x128xf32> to vector<64x128xbf16>
    %cst_8 = arith.constant dense<0.000000e+00> : vector<32x128xf32>
    %10 = tpu.matmul %8, %9, %cst_8 {dimension_numbers = #tpu.dot_dimension_numbers<[1], [0], [0], [1], [0, 0, 1, 1], [], []>} : vector<32x64xbf16>, vector<64x128xbf16>, vector<32x128xf32> -> vector<32x128xf32>
    %c0_9 = arith.constant 0 : index
    %c0_10 = arith.constant 0 : index
    %11 = vector.load %arg5[%c0_9, %c0_10] : memref<32x1xf32, #tpu.memory_space<vmem>>, vector<32x1xf32>
    %12 = vector.broadcast %11 : vector<32x1xf32> to vector<32x128xf32>
    %13 = arith.addf %10, %12 : vector<32x128xf32>
    %cst_11 = arith.constant 0.000000e+00 : f32
    %14 = vector.broadcast %cst_11 : f32 to vector<32x128xf32>
    %15 = arith.maximumf %13, %14 : vector<32x128xf32>
    %c0_12 = arith.constant 0 : index
    %c0_13 = arith.constant 0 : index
    %16 = vector.load %arg6[%c0_12, %c0_13] : memref<32x1xf32, #tpu.memory_space<vmem>>, vector<32x1xf32>
    %17 = vector.broadcast %16 : vector<32x1xf32> to vector<32x128xf32>
    %18 = arith.mulf %15, %17 : vector<32x128xf32>
    %cst_14 = arith.constant dense<0.000000e+00> : vector<128xf32>
    %19 = vector.multi_reduction <add>, %18, %cst_14 [0] : vector<32x128xf32> to vector<128xf32>
    %20 = vector.shape_cast %19 : vector<128xf32> to vector<1x128xf32>
    %c0_15 = arith.constant 0 : index
    %21 = memref.load %arg7[%c0_15] : memref<1xf32, #tpu.memory_space<smem>>
    %22 = vector.broadcast %21 : f32 to vector<1x128xf32>
    %23 = arith.addf %20, %22 : vector<1x128xf32>
    %c0_16 = arith.constant 0 : index
    %c0_17 = arith.constant 0 : index
    %24 = vector.load %arg8[%c0_16, %c0_17] : memref<1x128xf32, #tpu.memory_space<vmem>>, vector<1x128xf32>
    tpu.vector_store %arg8[%c0_16, %c0_17], %23 {strides = array<i32>} : memref<1x128xf32, #tpu.memory_space<vmem>>, vector<1x128xf32>,
    return
  }
  func.func @transform_0(%arg0: i32) -> (i32, i32) {
    %c0_i32 = arith.constant 0 : i32
    %c0_i32_0 = arith.constant 0 : i32
    return %c0_i32, %arg0 : i32, i32
  }
  func.func @transform_1(%arg0: i32) -> (i32, i32) {
    %c0_i32 = arith.constant 0 : i32
    %c0_i32_0 = arith.constant 0 : i32
    %c0_i32_1 = arith.constant 0 : i32
    return %c0_i32, %c0_i32_0 : i32, i32
  }
  func.func @transform_2(%arg0: i32) -> (i32, i32) {
    %c0_i32 = arith.constant 0 : i32
    %c0_i32_0 = arith.constant 0 : i32
    %c0_i32_1 = arith.constant 0 : i32
    return %c0_i32, %c0_i32_0 : i32, i32
  }
  func.func @transform_3(%arg0: i32) -> (i32, i32) {
    %c0_i32 = arith.constant 0 : i32
    %c0_i32_0 = arith.constant 0 : i32
    %c0_i32_1 = arith.constant 0 : i32
    return %c0_i32, %c0_i32_0 : i32, i32
  }
  func.func @transform_4(%arg0: i32) -> (i32, i32) {
    %c0_i32 = arith.constant 0 : i32
    %c0_i32_0 = arith.constant 0 : i32
    %c0_i32_1 = arith.constant 0 : i32
    return %c0_i32, %c0_i32_0 : i32, i32
  }
  func.func @transform_5(%arg0: i32) -> (i32, i32) {
    %c0_i32 = arith.constant 0 : i32
    %c0_i32_0 = arith.constant 0 : i32
    %c0_i32_1 = arith.constant 0 : i32
    return %c0_i32, %c0_i32_0 : i32, i32
  }
  func.func @transform_6(%arg0: i32) -> i32 {
    %c0_i32 = arith.constant 0 : i32
    %c0_i32_0 = arith.constant 0 : i32
    return %c0_i32 : i32
  }
  func.func @transform_7(%arg0: i32) -> (i32, i32) {
    %c0_i32 = arith.constant 0 : i32
    %c0_i32_0 = arith.constant 0 : i32
    return %c0_i32, %arg0 : i32, i32
  }
}

</mosaic_0001>

<bundles_post_ra>
// kernel: trading_model_forward.1
= control target key start
LH: loop header
LB: loop body
LE: loop exit
PB: predicated region body
PF: predicated region fallthrough
CT: control target
= control target key end

     0   :  { %vm116_vm0 = vcmask 162816   ;;  %v415_v0 = vmov 0   ;;  %vm129_vm1 = vcmask 1041408   ;;  %vm248_vm2 = vcmask 523264   ;;  %s540_s0 = inlined_call_operand.vmem [shape: bf16[20,128], index: 0, kind: input, shape index: {}]   ;;  %s541_s1 = inlined_call_operand.vmem [shape: bf16[64,20], index: 1, kind: input, shape index: {}]   ;;  %s542_s2 = inlined_call_operand.vmem [shape: f32[64,1], index: 2, kind: input, shape index: {}]   ;;  %s543_s4 = inlined_call_operand.vmem [shape: f32[32,1], index: 4, kind: input, shape index: {}]   ;;  %s544_s5 = inlined_call_operand.vmem [shape: f32[32,1], index: 5, kind: input, shape index: {}]   ;;  %s545_s3 = inlined_call_operand.vmem [shape: bf16[32,64], index: 3, kind: input, shape index: {}]   ;;  %s546_s6 = inlined_call_operand.<no memory space> [shape: f32[1], index: 6, kind: input, shape index: {}]   ;;  %s547_s7 = inlined_call_operand.vmem [shape: f32[1,128], index: 7, kind: output, shape index: {}]  }
   0x1   :  { %405 = vset.pattern.permute.xlu0 %v415_v0  ;;  %406 = vset.pattern.permute.xlu1 %v415_v0  ;;  %v407_v1 = vld [vmem:[%s540_s0] sm:$0xff]   ;;  %v408_v2 = vld [vmem:[%s540_s0 + $0x8] ss:$0 sps:$4 sm:$0x33]   ;;  %v41_v6 = vld [vmem:[%s542_s2 + $0x10] sm:$0xff] }
   0x2   :  { %v409_v3 = vld [vmem:[%s541_s1] sm:$0xff]   ;;  %379 = vmatprep.subr.bf16.mxu0 %v407_v1  ;;  %v131_v4 = vsel %vm129_vm1, %v408_v2, 0  ;;  %v410_v7 = vld [vmem:[%s541_s1 + $0x8] sm:$0xff]   ;;  %59 = vperm.xlu1 %406, %v41_v6   ;;  %v411_v9 = vld [vmem:[%s541_s1 + $0x10] sm:$0xff]  }
   0x3   :  { %380 = vmatpush3.bf16.msra.mxu0 %v407_v1  ;;  %383 = vmatprep.mubr.msk.bf16.mxu0 %vm116_vm0, %v409_v3  ;;  %v39_v5 = vld [vmem:[%s542_s2] sm:$0xff]  ;;  %v40_v8 = vld [vmem:[%s542_s2 + $0x8] sm:$0xff]  ;;  %v42_v10 = vld [vmem:[%s542_s2 + $0x18] sm:$0xff] }
   0x4   :  { %403 = vmatprep.subr.msk.bf16.mxu0 %vm129_vm1, %v408_v2  ;;  %49 = vperm.xlu0 %405, %v39_v5   ;;  %v43_v11 = vld [vmem:[%s542_s2 + $0x20] sm:$0xff]  ;;  %v44_v12 = vld [vmem:[%s542_s2 + $0x28] sm:$0xff]  ;;  %v412_v13 = vld [vmem:[%s541_s1 + $0x18] sm:$0xff]  }
   0x5   :  { %v45_v14 = vld [vmem:[%s542_s2 + $0x30] sm:$0xff]  ;;  %v46_v15 = vld [vmem:[%s542_s2 + $0x38] sm:$0xff]  ;;  %v214_v16 = vld [vmem:[%s543_s4] sm:$0xff] }
   0x6   :  { %64 = vperm.xlu1 %406, %v42_v10   ;;  %v215_v17 = vld [vmem:[%s543_s4 + $0x8] sm:$0xff]  ;;  %v216_v18 = vld [vmem:[%s543_s4 + $0x10] sm:$0xff]  ;;  %v217_v19 = vld [vmem:[%s543_s4 + $0x18] sm:$0xff] }
   0x7   :  { %382 = vmatpush3.bf16.msra.mxu0 %v131_v4  ;;  %v308_v20 = vld [vmem:[%s544_s5] sm:$0xff]  ;;  %v309_v21 = vld [vmem:[%s544_s5 + $0x8] sm:$0xff]  ;;  %v310_v22 = vld [vmem:[%s544_s5 + $0x10] sm:$0xff] }
   0x8   :  { %54 = vperm.xlu0 %405, %v40_v8   ;;  %v311_v23 = vld [vmem:[%s544_s5 + $0x18] sm:$0xff]  ;;  %v413_v24 = vld [vmem:[%s545_s3] sm:$0xff]   ;;  %v414_v61 = vld [vmem:[%s545_s3 + $0x8] sm:$0xff]  }
   0x9   :  { %399 = vmatprep.mubr.msk.bf16.mxu1 %vm248_vm2, %v413_v24 }
   0xa   :  { %384 = vmatmul.mubr.msk.bf16.vlgmr.msra.gmra.mrb[0].mxu0 %vm116_vm0, %v410_v7  ;;  %74 = vperm.xlu1 %406, %v44_v12  }
   0xb   :  { %387 = vmatprep.mubr.msk.bf16.mxu0 %vm116_vm0, %v411_v9 }
   0xc   :  { %69 = vperm.xlu0 %405, %v43_v11  }
   0xe   :  { %84 = vperm.xlu1 %406, %v46_v15  }
  0x10   :  { %79 = vperm.xlu0 %405, %v45_v14  }
  0x12   :  { %388 = vmatmul.mubr.msk.bf16.gmra.mrb[4].mxu0 %vm116_vm0, %v412_v13  ;;  %225 = vperm.xlu1 %406, %v215_v17  }
  0x14   :  { %220 = vperm.xlu0 %405, %v214_v16  }
  0x16   :  { %235 = vperm.xlu1 %406, %v217_v19  }
  0x18   :  { %230 = vperm.xlu0 %405, %v216_v18  }
  0x1a   :  { %319 = vperm.xlu1 %406, %v309_v21  }
  0x1c   :  { %314 = vperm.xlu0 %405, %v308_v20  }
  0x1e   :  { %329 = vperm.xlu1 %406, %v311_v23  }
  0x20   :  { %324 = vperm.xlu0 %405, %v310_v22  }
  0x81   :  { %v60_v26 = vpop.permute.xlu1 %59 }
  0x83   :  { %v50_v25 = vpop.permute.xlu0 %49 }
  0x85   :  { %v65_v28 = vpop.permute.xlu1 %64 }
  0x87   :  { %v55_v27 = vpop.permute.xlu0 %54 }
  0x89   :  { %v75_v37 = vpop.permute.xlu1 %74 }
  0x8b   :  { %v70_v32 = vpop.permute.xlu0 %69 }
  0x8d   :  { %v85_v49 = vpop.permute.xlu1 %84 }
  0x8f   :  { %v80_v44 = vpop.permute.xlu0 %79 }
  0x91   :  { %v226_v63 = vpop.permute.xlu1 %225 }
  0x93   :  { %v221_v62 = vpop.permute.xlu0 %220 }
  0x95   :  { %v236_v1 = vpop.permute.xlu1 %235 }
  0x97   :  { %v231_v0 = vpop.permute.xlu0 %230 }
  0x99   :  { %v320_v12 = vpop.permute.xlu1 %319 }
  0x9b   :  { %v315_v7 = vpop.permute.xlu0 %314 }
  0x9d   :  { %v330_v21 = vpop.permute.xlu1 %329 }
  0x9f   :  { %v325_v18 = vpop.permute.xlu0 %324 }
  0xdd   :  { %v385_v29 = vpop.f32.mrb[0].mxu0 }
  0xde   :  { %v176_v30 = vadd.f32 %v385_v29, %v60_v26  ;;  %v167_v31 = vpop.f32.mrb[1].mxu0 }
  0xdf   :  { %v168_v33 = vadd.f32 %v167_v31, %v50_v25  ;;  %v386_v34 = vpop.f32.mrb[2].mxu0 }
  0xe0   :  { %v179_v35 = vadd.f32 %v386_v34, %v65_v28  ;;  %v170_v36 = vpop.f32.mrb[3].mxu0  ;;  %v200_v39 = vmax.f32 %v176_v30, 0.0  ;;  %v346_v30 = vstv %s546_s6 }
  0xe1   :  { %v171_v38 = vadd.f32 %v170_v36, %v55_v27  ;;  %v198_v41 = vmax.f32 %v168_v33, 0.0 }
  0xe2   :  { %v201_v40 = vmax.f32 %v179_v35, 0.0 }
  0xe3   :  { %v199_v42 = vmax.f32 %v171_v38, 0.0 }
  0xe4   :  { %v211_v43 = vpack.c.bf16 %v201_v40, %v200_v39 }
  0xe5   :  { %v389_v45 = vpop.f32.mrb[4].mxu0  ;;  %v210_v46 = vpack.c.bf16 %v199_v42, %v198_v41 }
  0xe6   :  { %v192_v47 = vadd.f32 %v389_v45, %v80_v44  ;;  %v183_v48 = vpop.f32.mrb[5].mxu0 }
  0xe7   :  { %v184_v50 = vadd.f32 %v183_v48, %v70_v32  ;;  %v390_v51 = vpop.f32.mrb[6].mxu0  ;;  %391 = vmatprep.subr.bf16.mxu1 %v210_v46 }
  0xe8   :  { %v195_v52 = vadd.f32 %v390_v51, %v85_v49  ;;  %v186_v53 = vpop.f32.mrb[7].mxu0  ;;  %392 = vmatpush3.bf16.msra.mxu1 %v210_v46  ;;  %v204_v55 = vmax.f32 %v192_v47, 0.0 }
  0xe9   :  { %v187_v54 = vadd.f32 %v186_v53, %v75_v37  ;;  %393 = vmatprep.subr.bf16.mxu1 %v211_v43  ;;  %v202_v57 = vmax.f32 %v184_v50, 0.0 }
  0xea   :  { %v205_v56 = vmax.f32 %v195_v52, 0.0 }
  0xeb   :  { %v203_v58 = vmax.f32 %v187_v54, 0.0 }
  0xec   :  { %v213_v59 = vpack.c.bf16 %v205_v56, %v204_v55  ;;  %394 = vmatpush3.bf16.msra.mxu1 %v211_v43 }
  0xed   :  { %v212_v60 = vpack.c.bf16 %v203_v58, %v202_v57 }
  0xef   :  { %395 = vmatprep.subr.bf16.mxu1 %v212_v60 }
  0xf0   :  { %396 = vmatpush3.bf16.msra.mxu1 %v212_v60 }
  0xf1   :  { %397 = vmatprep.subr.bf16.mxu1 %v213_v59 }
  0xf4   :  { %398 = vmatpush3.bf16.msra.mxu1 %v213_v59 }
  0xf7   :  { %400 = vmatmul.mubr.msk.bf16.vlgmr.msra.gmra.mrb[0].mxu1 %vm248_vm2, %v414_v61 }
 0x1ca   :  { %v401_v2 = vpop.f32.mrb[0].mxu1 }
 0x1cb   :  { %v289_v3 = vpop.f32.mrb[1].mxu1  ;;  %v298_v4 = vadd.f32 %v401_v2, %v231_v0 }
 0x1cc   :  { %v290_v5 = vadd.f32 %v289_v3, %v221_v62  ;;  %v402_v6 = vpop.f32.mrb[2].mxu1 }
 0x1cd   :  { %v292_v8 = vpop.f32.mrb[3].mxu1  ;;  %v301_v10 = vadd.f32 %v402_v6, %v236_v1  ;;  %v306_v13 = vmax.f32 %v298_v4, 0.0 }
 0x1ce   :  { %v304_v9 = vmax.f32 %v290_v5, 0.0  ;;  %v293_v11 = vadd.f32 %v292_v8, %v226_v63 }
 0x1cf   :  { %v307_v16 = vmax.f32 %v301_v10, 0.0  ;;  %v334_v19 = vmul.f32 %v325_v18, %v306_v13 }
 0x1d0   :  { %v305_v14 = vmax.f32 %v293_v11, 0.0  ;;  %v332_v15 = vmul.f32 %v315_v7, %v304_v9 }
 0x1d1   :  { %v335_v22 = vmul.f32 %v330_v21, %v307_v16 }
 0x1d2   :  { %v333_v17 = vmul.f32 %v320_v12, %v305_v14 }
 0x1d4   :  { %v336_v20 = vadd.f32 %v333_v17, %v332_v15 }
 0x1d6   :  { %v337_v23 = vadd.f32 %v336_v20, %v334_v19 }
 0x1d8   :  { %v338_v24 = vadd.f32 %v337_v23, %v335_v22 }
 0x1da   :  { %v339_v25 = vrot.slane %v338_v24, 4 }
 0x1dc   :  { %v340_v26 = vadd.f32 %v339_v25, %v338_v24 }
 0x1de   :  { %v341_v27 = vrot.slane %v340_v26, 2 }
 0x1e0   :  { %v342_v28 = vadd.f32 %v341_v27, %v340_v26 }
 0x1e2   :  { %v343_v29 = vrot.slane %v342_v28, 1 }
 0x1e4   :  { %v344_v31 = vadd.f32 %v343_v29, %v342_v28 }
 0x1e6   :  { %v347_v32 = vadd.f32 %v346_v30, %v344_v31 }
 0x1e8   :  { %348 = vst [vmem:[%s547_s7] sm:$0x1] %v347_v32 }

</bundles_post_ra>
